<compile_context>
chip_gen: v7x
topology: tpu7x:2x2x1
jax: 0.10.0
libtpu: 0.0.40
codegen_flags: <defaults>
</compile_context>

<pallas_src>
import jax
import jax.numpy as jnp
from jax.experimental import pallas as pl
from jax.experimental.pallas import tpu as pltpu


def _additive_attention_kernel(q_ref, k_ref, v_ref, wq_ref, wk_ref, wv_ref, out_ref):
    Bb, Q, Dq = q_ref.shape
    _, K, Dk = k_ref.shape
    _, _, Dv = v_ref.shape
    H = wq_ref.shape[1]

    wq = wq_ref[...]          # (Dq, H)
    wk = wk_ref[...]          # (Dk, H)
    wv = wv_ref[...]          # (H, 1)  sublane-major: matches K-on-lanes layout

    # ---- Projections on the MXU, batch folded into the M dimension --------
    # (leading-dim-only reshapes: last dim unchanged, cheap/safe relayout)
    q2 = q_ref[...].reshape(Bb * Q, Dq)
    k2 = k_ref[...].reshape(Bb * K, Dk)
    qh = jnp.dot(q2, wq, preferred_element_type=jnp.float32)     # (Bb*Q, H)
    kh = jnp.dot(k2, wk, preferred_element_type=jnp.float32)     # (Bb*K, H)

    qh = qh.reshape(Bb, Q, H)                                     # (Bb, Q, H)
    khT = jnp.swapaxes(kh.reshape(Bb, K, H), 1, 2)                # (Bb, H, K)

    # ---- Additive features + tanh, K on the lane axis ----------------------
    feats = jnp.tanh(qh[:, :, :, None] + khT[:, None, :, :])      # (Bb, Q, H, K)

    # scores[b,q,k] = sum_h wv[h] * feats[b,q,h,k]   (sublane reduce over H)
    scores = jnp.sum(feats * wv[None, None, :, :], axis=2)        # (Bb, Q, K)

    # ---- Softmax over the key (lane) axis ----------------------------------
    m = jnp.max(scores, axis=-1, keepdims=True)
    e = jnp.exp(scores - m)
    denom = jnp.sum(e, axis=-1, keepdims=True)
    attn = e * pl.reciprocal(denom, approx=True)                  # (Bb, Q, K)

    # ---- Weighted sum of values: batched (Q,K) @ (K,Dv) --------------------
    v = v_ref[...]
    out = jnp.einsum("bqk,bkd->bqd", attn.astype(v.dtype), v,
                     preferred_element_type=jnp.float32)          # (Bb, Q, Dv)
    out_ref[...] = out.astype(out_ref.dtype)


def _block_bytes(Bb, Q, K, Dq, Dk, Dv, H, itemsize):
    """Rough per-grid-step VMEM footprint for a batch block of size Bb."""
    io = 2 * Bb * (Q * Dq + K * Dk + K * Dv + Q * Dv) * itemsize   # double-buffered I/O
    weights = (Dq * H + Dk * H + H) * itemsize
    # f32 intermediates (feats dominates; qh/kh/scores/attn are small extras)
    inter = 4 * (Bb * Q * H * K + Bb * (Q + K) * H + 3 * Bb * Q * K)
    return io + weights + inter


def _pick_batch_block(B, Q, K, Dq, Dk, Dv, H, itemsize,
                      target_m=512, vmem_budget=16 * 1024 * 1024):
    """Largest batch block dividing B with Bblk*Q ~<= target_m and whose
    working set (dominated by the (Bblk, Q, H, K) f32 feature tensor plus
    double-buffered I/O blocks) fits in a conservative VMEM budget.

    (On v7x, if B*Q is large, prefer leaving >=2 grid blocks so both
    TensorCores get work via the "parallel" grid axis.)"""
    bb = max(1, min(B, target_m // max(Q, 1)))
    while bb > 1 and (B % bb or
                      _block_bytes(bb, Q, K, Dq, Dk, Dv, H, itemsize) > vmem_budget):
        bb -= 1
    return bb


def additive_attention(values, keys, queries, wq, wk, wv, *, batch_block=None):
    """values: (B, K, Dv), keys: (B, K, Dk), queries: (B, Q, Dq)
    wq: (Dq, H), wk: (Dk, H), wv: (H, 1)  (pre-transposed nn.Linear weights)
    Returns (B, Q, Dv)."""
    B, Kk, Dv = values.shape
    _, _, Dk = keys.shape
    _, Q, Dq = queries.shape
    H = wq.shape[1]

    if batch_block is not None:
        Bb = batch_block
    else:
        Bb = _pick_batch_block(B, Q, Kk, Dq, Dk, Dv, H, queries.dtype.itemsize)
    assert B % Bb == 0
    grid = (B // Bb,)

    return pl.pallas_call(
        _additive_attention_kernel,
        out_shape=jax.ShapeDtypeStruct((B, Q, Dv), queries.dtype),
        grid_spec=pltpu.PrefetchScalarGridSpec(
            num_scalar_prefetch=0,
            grid=grid,
            in_specs=[
                pl.BlockSpec((Bb, Q, Dq), lambda b: (b, 0, 0)),   # queries
                pl.BlockSpec((Bb, Kk, Dk), lambda b: (b, 0, 0)),  # keys
                pl.BlockSpec((Bb, Kk, Dv), lambda b: (b, 0, 0)),  # values
                pl.BlockSpec((Dq, H), lambda b: (0, 0)),          # W_q^T
                pl.BlockSpec((Dk, H), lambda b: (0, 0)),          # W_k^T
                pl.BlockSpec((H, 1), lambda b: (0, 0)),           # w_v^T
            ],
            out_specs=pl.BlockSpec((Bb, Q, Dv), lambda b: (b, 0, 0)),
        ),
        compiler_params=pltpu.CompilerParams(
            dimension_semantics=("parallel",),
            vmem_limit_bytes=32 * 1024 * 1024),
    )(queries, keys, values, wq, wk, wv)


def _reference(values, keys, queries, wq, wk, wv):
    qh = jnp.einsum("bqd,dh->bqh", queries, wq)
    kh = jnp.einsum("bkd,dh->bkh", keys, wk)
    feats = jnp.tanh(qh[:, :, None, :] + kh[:, None, :, :])
    scores = jnp.einsum("bqkh,h->bqk", feats, wv[:, 0])
    attn = jax.nn.softmax(scores, axis=-1)
    return jnp.einsum("bqk,bkd->bqd", attn, values)


if __name__ == "__main__":
    key = jax.random.PRNGKey(0)
    B, Q, K = 2, 8, 8
    query_size, key_size, value_size, num_hiddens = 16, 16, 16, 32

    k1, k2, k3, k4, k5, k6 = jax.random.split(key, 6)
    queries = jax.random.normal(k1, (B, Q, query_size), dtype=jnp.float32)
    keys = jax.random.normal(k2, (B, K, key_size), dtype=jnp.float32)
    values = jax.random.normal(k3, (B, K, value_size), dtype=jnp.float32)

    # Deterministic parameter init (nn.Linear weights, stored pre-transposed).
    wq = jax.random.normal(k4, (query_size, num_hiddens), dtype=jnp.float32) * 0.1
    wk = jax.random.normal(k5, (key_size, num_hiddens), dtype=jnp.float32) * 0.1
    wv = jax.random.normal(k6, (num_hiddens, 1), dtype=jnp.float32) * 0.1

    out = additive_attention(values, keys, queries, wq, wk, wv)
    out = jax.block_until_ready(out)

    ref = _reference(values, keys, queries, wq, wk, wv)
    assert out.shape == (B, Q, value_size)
    # approx reciprocal in the softmax denominator introduces a tiny numeric
    # delta vs the exact f32 reference; tolerance loosened accordingly.
    assert jnp.allclose(out, ref, atol=2e-3, rtol=2e-3), "mismatch vs reference"

    print("KERNEL_OK")
</pallas_src>

<mosaic_0001>
module attributes {stable_mosaic.version = 11 : i64} {
  func.func @_additive_attention_kernel(%arg0: i32, %arg1: memref<2x8x16xf32, #tpu.memory_space<vmem>>, %arg2: memref<2x8x16xf32, #tpu.memory_space<vmem>>, %arg3: memref<2x8x16xf32, #tpu.memory_space<vmem>>, %arg4: memref<16x32xf32, #tpu.memory_space<vmem>>, %arg5: memref<16x32xf32, #tpu.memory_space<vmem>>, %arg6: memref<32x1xf32, #tpu.memory_space<vmem>>, %arg7: memref<2x8x16xf32, #tpu.memory_space<vmem>>) attributes {dimension_semantics = [#tpu.dimension_semantics<parallel>], iteration_bounds = array<i64: 1>, scalar_prefetch = 0 : i64, scratch_operands = 0 : i64, tpu.core_type = #tpu.core_type<tc>, window_params = [{transform_indices = @transform_0, window_bounds = array<i64: 2, 8, 16>}, {transform_indices = @transform_1, window_bounds = array<i64: 2, 8, 16>}, {transform_indices = @transform_2, window_bounds = array<i64: 2, 8, 16>}, {pipeline_mode = #tpu.pipeline_mode<synchronous>, transform_indices = @transform_3, window_bounds = array<i64: 16, 32>}, {pipeline_mode = #tpu.pipeline_mode<synchronous>, transform_indices = @transform_4, window_bounds = array<i64: 16, 32>}, {pipeline_mode = #tpu.pipeline_mode<synchronous>, transform_indices = @transform_5, window_bounds = array<i64: 32, 1>}, {transform_indices = @transform_6, window_bounds = array<i64: 2, 8, 16>}]} {
    %c0 = arith.constant 0 : index
    %c0_0 = arith.constant 0 : index
    %0 = vector.load %arg4[%c0, %c0_0] : memref<16x32xf32, #tpu.memory_space<vmem>>, vector<16x32xf32>
    %c0_1 = arith.constant 0 : index
    %c0_2 = arith.constant 0 : index
    %1 = vector.load %arg5[%c0_1, %c0_2] : memref<16x32xf32, #tpu.memory_space<vmem>>, vector<16x32xf32>
    %c0_3 = arith.constant 0 : index
    %c0_4 = arith.constant 0 : index
    %2 = vector.load %arg6[%c0_3, %c0_4] : memref<32x1xf32, #tpu.memory_space<vmem>>, vector<32x1xf32>
    %c0_5 = arith.constant 0 : index
    %c0_6 = arith.constant 0 : index
    %c0_7 = arith.constant 0 : index
    %3 = vector.load %arg1[%c0_5, %c0_6, %c0_7] : memref<2x8x16xf32, #tpu.memory_space<vmem>>, vector<2x8x16xf32>
    %4 = vector.shape_cast %3 : vector<2x8x16xf32> to vector<16x16xf32>
    %c0_8 = arith.constant 0 : index
    %c0_9 = arith.constant 0 : index
    %c0_10 = arith.constant 0 : index
    %5 = vector.load %arg2[%c0_8, %c0_9, %c0_10] : memref<2x8x16xf32, #tpu.memory_space<vmem>>, vector<2x8x16xf32>
    %6 = vector.shape_cast %5 : vector<2x8x16xf32> to vector<16x16xf32>
    %cst = arith.constant dense<0.000000e+00> : vector<16x32xf32>
    %7 = tpu.matmul %4, %0, %cst {dimension_numbers = #tpu.dot_dimension_numbers<[1], [0], [0], [1], [0, 0, 1, 1], [], []>} : vector<16x16xf32>, vector<16x32xf32>, vector<16x32xf32> -> vector<16x32xf32>
    %cst_11 = arith.constant dense<0.000000e+00> : vector<16x32xf32>
    %8 = tpu.matmul %6, %1, %cst_11 {dimension_numbers = #tpu.dot_dimension_numbers<[1], [0], [0], [1], [0, 0, 1, 1], [], []>} : vector<16x16xf32>, vector<16x32xf32>, vector<16x32xf32> -> vector<16x32xf32>
    %9 = vector.shape_cast %7 : vector<16x32xf32> to vector<2x8x32xf32>
    %10 = vector.shape_cast %8 : vector<16x32xf32> to vector<2x8x32xf32>
    %11 = tpu.transpose %10, [0, 2, 1] : vector<2x8x32xf32> -> vector<2x32x8xf32>
    %12 = vector.shape_cast %9 : vector<2x8x32xf32> to vector<2x8x32x1xf32>
    %13 = vector.shape_cast %11 : vector<2x32x8xf32> to vector<2x1x32x8xf32>
    %14 = vector.broadcast %12 : vector<2x8x32x1xf32> to vector<2x8x32x8xf32>
    %15 = vector.broadcast %13 : vector<2x1x32x8xf32> to vector<2x8x32x8xf32>
    %16 = arith.addf %14, %15 : vector<2x8x32x8xf32>
    %17 = math.tanh %16 : vector<2x8x32x8xf32>
    %18 = vector.shape_cast %2 : vector<32x1xf32> to vector<1x1x32x1xf32>
    %19 = vector.broadcast %18 : vector<1x1x32x1xf32> to vector<2x8x32x8xf32>
    %20 = arith.mulf %17, %19 : vector<2x8x32x8xf32>
    %cst_12 = arith.constant dense<0.000000e+00> : vector<2x8x8xf32>
    %21 = vector.multi_reduction <add>, %20, %cst_12 [2] : vector<2x8x32x8xf32> to vector<2x8x8xf32>
    %cst_13 = arith.constant dense<0xFF800000> : vector<2x8xf32>
    %22 = vector.multi_reduction <maximumf>, %21, %cst_13 [2] : vector<2x8x8xf32> to vector<2x8xf32>
    %23 = vector.shape_cast %22 : vector<2x8xf32> to vector<2x8x1xf32>
    %24 = vector.broadcast %23 : vector<2x8x1xf32> to vector<2x8x8xf32>
    %25 = arith.subf %21, %24 : vector<2x8x8xf32>
    %26 = math.exp %25 : vector<2x8x8xf32>
    %cst_14 = arith.constant dense<0.000000e+00> : vector<2x8xf32>
    %27 = vector.multi_reduction <add>, %26, %cst_14 [2] : vector<2x8x8xf32> to vector<2x8xf32>
    %28 = vector.shape_cast %27 : vector<2x8xf32> to vector<2x8x1xf32>
    %29 = tpu.reciprocal %28 {approx = true} : vector<2x8x1xf32> -> vector<2x8x1xf32>
    %30 = vector.broadcast %29 : vector<2x8x1xf32> to vector<2x8x8xf32>
    %31 = arith.mulf %26, %30 : vector<2x8x8xf32>
    %c0_15 = arith.constant 0 : index
    %c0_16 = arith.constant 0 : index
    %c0_17 = arith.constant 0 : index
    %32 = vector.load %arg3[%c0_15, %c0_16, %c0_17] : memref<2x8x16xf32, #tpu.memory_space<vmem>>, vector<2x8x16xf32>
    "tpu.trace_start"() <{level = 10 : i32, message = "bqk,bkd->bqd"}> : () -> ()
    %cst_18 = arith.constant dense<0.000000e+00> : vector<2x8x16xf32>
    %33 = tpu.matmul %31, %32, %cst_18 {dimension_numbers = #tpu.dot_dimension_numbers<[2], [1], [1], [2], [0, 0, 0, 1, 1, 2], [0], [0]>} : vector<2x8x8xf32>, vector<2x8x16xf32>, vector<2x8x16xf32> -> vector<2x8x16xf32>
    "tpu.trace_stop"() : () -> ()
    %c0_19 = arith.constant 0 : index
    %c0_20 = arith.constant 0 : index
    %c0_21 = arith.constant 0 : index
    %34 = vector.load %arg7[%c0_19, %c0_20, %c0_21] : memref<2x8x16xf32, #tpu.memory_space<vmem>>, vector<2x8x16xf32>
    tpu.vector_store %arg7[%c0_19, %c0_20, %c0_21], %33 {strides = array<i32>} : memref<2x8x16xf32, #tpu.memory_space<vmem>>, vector<2x8x16xf32>,
    return
  }
  func.func @transform_0(%arg0: i32) -> (i32, i32, i32) {
    %c0_i32 = arith.constant 0 : i32
    %c0_i32_0 = arith.constant 0 : i32
    %c0_i32_1 = arith.constant 0 : i32
    return %arg0, %c0_i32, %c0_i32_0 : i32, i32, i32
  }
  func.func @transform_1(%arg0: i32) -> (i32, i32, i32) {
    %c0_i32 = arith.constant 0 : i32
    %c0_i32_0 = arith.constant 0 : i32
    %c0_i32_1 = arith.constant 0 : i32
    return %arg0, %c0_i32, %c0_i32_0 : i32, i32, i32
  }
  func.func @transform_2(%arg0: i32) -> (i32, i32, i32) {
    %c0_i32 = arith.constant 0 : i32
    %c0_i32_0 = arith.constant 0 : i32
    %c0_i32_1 = arith.constant 0 : i32
    return %arg0, %c0_i32, %c0_i32_0 : i32, i32, i32
  }
  func.func @transform_3(%arg0: i32) -> (i32, i32) {
    %c0_i32 = arith.constant 0 : i32
    %c0_i32_0 = arith.constant 0 : i32
    %c0_i32_1 = arith.constant 0 : i32
    return %c0_i32, %c0_i32_0 : i32, i32
  }
  func.func @transform_4(%arg0: i32) -> (i32, i32) {
    %c0_i32 = arith.constant 0 : i32
    %c0_i32_0 = arith.constant 0 : i32
    %c0_i32_1 = arith.constant 0 : i32
    return %c0_i32, %c0_i32_0 : i32, i32
  }
  func.func @transform_5(%arg0: i32) -> (i32, i32) {
    %c0_i32 = arith.constant 0 : i32
    %c0_i32_0 = arith.constant 0 : i32
    %c0_i32_1 = arith.constant 0 : i32
    return %c0_i32, %c0_i32_0 : i32, i32
  }
  func.func @transform_6(%arg0: i32) -> (i32, i32, i32) {
    %c0_i32 = arith.constant 0 : i32
    %c0_i32_0 = arith.constant 0 : i32
    %c0_i32_1 = arith.constant 0 : i32
    return %arg0, %c0_i32, %c0_i32_0 : i32, i32, i32
  }
}

</mosaic_0001>

<bundles_post_ra>
// kernel: tpu_custom_call.1
= control target key start
LH: loop header
LB: loop body
LE: loop exit
PB: predicated region body
PF: predicated region fallthrough
CT: control target
= control target key end

     0   :  { %11 = vsyncpa [#allocation3], 0  ;;  %s2645_s0 = inlined_call_operand.vmem [shape: f32[2,8,16], index: 0, kind: input, shape index: {}]   ;;  %s2646_s1 = inlined_call_operand.vmem [shape: f32[2,8,16], index: 1, kind: input, shape index: {}]   ;;  %s2647_s2 = inlined_call_operand.hbm [shape: f32[2,8,16], index: 2, kind: input, shape index: {}]   ;;  %s2648_s3 = inlined_call_operand.hbm [shape: f32[16,32], index: 3, kind: input, shape index: {}]   ;;  %s2649_s4 = inlined_call_operand.vmem [shape: f32[16,32], index: 4, kind: input, shape index: {}]   ;;  %s2650_s5 = inlined_call_operand.vmem [shape: f32[32,1], index: 5, kind: input, shape index: {}]   ;;  %s2651_s6 = inlined_call_operand.hbm [shape: f32[2,8,16], index: 6, kind: output, shape index: {}]  }
   0x1   :  { %12 = vsyncpa [#allocation6], 0 }
   0x2   :  { %13 = vsyncpa [#allocation4], 0  ;;  %s1749_s21 = smov [#allocation2]   ;;  %s1677_s25 = scalar_lea.hbm %s2647_s2, 256 }
   0x3   :  { %s23_s22 = sshll.u32 %s1749_s21, 4  ;;  %p1678_p0 = scmp.ne.s32.totalorder %s2647_s2, %s1677_s25  ;;  %s24_s22 = int_to_ptr.vmem [resolvable:$true] %s23_s22 }
   0x4   :  { %p1681_p1 = scmp.lt.u32.totalorder %s1677_s25, %s2647_s2 }
   0x6   :  { %p1683_p2 = pnand %p1681_p1, %p1678_p0 }
   0x8   :  { %1686 = shalt.err (!%p1683_p2)
}
   0x9   :  { %s1687_s30 = scalar_lea.vmem %s24_s22, 256  ;;  %p1692_p4 = scmp.lt.s32.totalorder %s24_s22, %s24_s22 }
   0xa   :  { %p1688_p3 = scmp.ne.s32.totalorder %s24_s22, %s1687_s30  ;;  %p1693_p5 = scmp.lt.s32.totalorder %s1687_s30, %s1687_s30 }
   0xc   :  { %p1694_p6 = por %p1693_p5, %p1692_p4 }
   0xe   :  { %p1695_p7 = pnand %p1694_p6, %p1688_p3 }
  0x10   :  { %1698 = shalt.err (!%p1695_p7)
}
  0x11   :  { %s1750_s7 = smov 128   ;;  %s1751_s8 = smov 8  }
  0x12   :  { %29 = dma.hbm_to_vmem [thread:$0]  %s2647_s2, 256, %s24_s22, [#allocation3], %s1750_s7, %s1750_s7, %s1751_s8  }
  0x13   :  { %s1752_s11 = smov [#allocation5]   ;;  %s1699_s15 = scalar_lea.hbm %s2648_s3, 256 }
  0x14   :  { %s35_s12 = sshll.u32 %s1752_s11, 4  ;;  %p1700_p8 = scmp.ne.s32.totalorder %s2648_s3, %s1699_s15  ;;  %s36_s12 = int_to_ptr.vmem [resolvable:$true] %s35_s12 }
  0x15   :  { %p1703_p9 = scmp.lt.u32.totalorder %s1699_s15, %s2648_s3 }
  0x17   :  { %p1705_p10 = pnand %p1703_p9, %p1700_p8 }
  0x19   :  { %1708 = shalt.err (!%p1705_p10)
}
  0x1a   :  { %s1709_s20 = scalar_lea.vmem %s36_s12, 256  ;;  %p1714_p12 = scmp.lt.s32.totalorder %s36_s12, %s36_s12 }
  0x1b   :  { %p1710_p11 = scmp.ne.s32.totalorder %s36_s12, %s1709_s20  ;;  %p1715_p13 = scmp.lt.s32.totalorder %s1709_s20, %s1709_s20 }
  0x1d   :  { %p1716_p0 = por %p1715_p13, %p1714_p12 }
  0x1f   :  { %p1717_p1 = pnand %p1716_p0, %p1710_p11 }
  0x21   :  { %1720 = shalt.err (!%p1717_p1)
}
  0x22   :  { %41 = dma.hbm_to_vmem [thread:$0]  %s2648_s3, 256, %s36_s12, [#allocation6], %s1750_s7, %s1750_s7, %s1751_s8  }
  0x23   :  { %1743 = dma.done.wait [#allocation3], 256  }
  0x24   :  { %1744 = vsyncadd [#allocation3], 4294967040 }
  0x25   :  { %1745 = dma.done.wait [#allocation6], 256  }
  0x26   :  { %1746 = vsyncadd [#allocation6], 4294967040  ;;  %v1753_v0 = vmov 0   ;;  %vm64_vm0 = vcmask 130048   ;;  %v52_v1 = vld [vmem:[#allocation5] sm:$0xff]  ;;  %v53_v2 = vld [vmem:[#allocation5 + $0x8] sm:$0xff]  ;;  %v291_v15 = vlaneseq }
  0x27   :  { %1512 = vset.pattern.permute.xlu1 %v1753_v0  ;;  %1511 = vset.pattern.permute.xlu0 %v1753_v0  ;;  %v60_v3 = vld [vmem:[%s2645_s0] sm:$0xff]  ;;  %v1495_v4 = vpack.c.bf16 %v53_v2, %v52_v1  ;;  %v55_v6 = vld [vmem:[%s2649_s4 + $0x8] sm:$0xff]  ;;  %v58_v13 = vld [vmem:[%s2650_s5 + $0x10] sm:$0xff]  ;;  %vm807_vm1 = vcmask 64512   ;;  %vm1032_vm2 = vcmask 1041409   ;;  %vm1034_vm3 = vcmask 1042434  }
  0x28   :  { %1475 = vmatprep.mubr.msk.f32.mxu0 %vm64_vm0, %v60_v3  ;;  %v54_v5 = vld [vmem:[%s2649_s4] sm:$0xff]  ;;  %v57_v9 = vld [vmem:[%s2650_s5 + $0x8] sm:$0xff]  ;;  %v59_v14 = vld [vmem:[%s2650_s5 + $0x18] sm:$0xff]  ;;  %v1856_v16 = vshrl.u32 %v291_v15, 7  ;;  %vm1036_vm4 = vcmask 1043459   ;;  %vm1038_vm5 = vcmask 1044484  }
  0x29   :  { %v1499_v7 = vpack.c.bf16 %v55_v6, %v54_v5  ;;  %v62_v8 = vld [vmem:[%s2646_s1] sm:$0xff]  ;;  %1496 = vmatprep.subr.bf16.mxu0 %v1495_v4  ;;  %v61_v11 = vld [vmem:[%s2645_s0 + $0x8] sm:$0xff]  ;;  %730 = vperm.xlu1 %1512, %v57_v9   ;;  %vm1040_vm6 = vcmask 1045509   ;;  %vm1042_vm7 = vcmask 1046534   ;;  %vm1044_vm8 = vcmask 1047559   ;;  %s1756_s0 = smov [#allocation7]  }
  0x2a   :  { %1482 = vmatprep.mubr.msk.f32.mxu1 %vm64_vm0, %v62_v8  ;;  %v56_v10 = vld [vmem:[%s2650_s5] sm:$0xff]  ;;  %1498 = vmatpush3.bf16.msra.mxu0 %v1495_v4  ;;  %v63_v12 = vld [vmem:[%s2646_s1 + $0x8] sm:$0xff]  ;;  %v293_v17 = vsub.s32 0, %v1856_v16  ;;  %v312_v18 = vsub.s32 1, %v1856_v16  ;;  %v388_v20 = vsub.s32 5, %v1856_v16  ;;  %v407_v21 = vsub.s32 6, %v1856_v16 }
  0x2b   :  { %1500 = vmatprep.subr.bf16.mxu1 %v1499_v7  ;;  %725 = vperm.xlu0 %1511, %v56_v10   ;;  %v426_v24 = vsub.s32 7, %v1856_v16  ;;  %v331_v29 = vsub.s32 2, %v1856_v16  ;;  %v350_v32 = vsub.s32 3, %v1856_v16  ;;  %v369_v34 = vsub.s32 4, %v1856_v16  ;;  %s1440_s1 = sshll.u32 %s1756_s0, 4  ;;  %s1441_s1 = int_to_ptr.vmem [resolvable:$true] %s1440_s1 }
  0x2c   :  { %1502 = vmatpush3.bf16.msra.mxu1 %v1499_v7  ;;  %vm1755_vm9 = vmmov 0   ;;  %s1721_s5 = scalar_lea.vmem %s1441_s1, 256  ;;  %p1726_p3 = scmp.lt.s32.totalorder %s1441_s1, %s1441_s1 }
  0x2d   :  { %1476 = vmatmul.mubr.msk.f32.vlgmr.msra.gmra.mrb[0].mxu0 %vm64_vm0, %v61_v11  ;;  %735 = vperm.xlu1 %1512, %v58_v13   ;;  %p1722_p2 = scmp.ne.s32.totalorder %s1441_s1, %s1721_s5  ;;  %p1727_p4 = scmp.lt.s32.totalorder %s1721_s5, %s1721_s5 }
  0x2f   :  { %1483 = vmatmul.mubr.msk.f32.vlgmr.msra.gmra.mrb[0].mxu1 %vm64_vm0, %v63_v12  ;;  %740 = vperm.xlu0 %1511, %v59_v14   ;;  %p1728_p5 = por %p1727_p4, %p1726_p3 }
  0x31   :  { %p1729_p6 = pnand %p1728_p5, %p1722_p2 }
  0xa8   :  { %v1885_v45 = vpop.permute.xlu1 %730 }
  0xa9   :  { %2655 = vst [vmem:[#allocation11_spill] sm:$0xff] %v1885_v45 }
  0xaa   :  { %v1887_v46 = vpop.permute.xlu0 %725 }
  0xac   :  { %v1891_v47 = vpop.permute.xlu1 %735 }
  0xad   :  { %2656 = vst [vmem:[#allocation12_spill] sm:$0xff] %v1891_v47 }
  0xae   :  { %v1893_v48 = vpop.permute.xlu0 %740 }
  0xaf   :  { %2657 = vst [vmem:[#allocation13_spill] sm:$0xff] %v1893_v48 }
 0x100   :  { %v1477_v19 = vpop.f32.mrb[0].mxu0 }
 0x101   :  { %v137_v22 = vpop.f32.mrb[1].mxu0  ;;  %v446_v23 = vrot.slane %v1477_v19, %v293_v17  ;;  %v465_v28 = vrot.slane %v1477_v19, %v312_v18  ;;  %v484_v31 = vrot.slane %v1477_v19, %v331_v29  ;;  %v503_v33 = vrot.slane %v1477_v19, %v350_v32 }
 0x102   :  { %v1863_v25 = vrot.slane %v137_v22, %v312_v18  ;;  %v1865_v26 = vrot.slane %v137_v22, %v388_v20  ;;  %v1867_v27 = vrot.slane %v137_v22, %v407_v21  ;;  %v1870_v30 = vrot.slane %v137_v22, %v426_v24  ;;  %v1874_v36 = vpop.f32.mrb[0].mxu1 }
 0x103   :  { %452 = vbcast.lane.b32.xlu1 %v446_v23, 264  ;;  %448 = vbcast.lane.b32.xlu0 %v446_v23, 256  ;;  %v522_v35 = vrot.slane %v1477_v19, %v369_v34  ;;  %v541_v37 = vrot.slane %v1477_v19, %v388_v20  ;;  %v560_v38 = vrot.slane %v1477_v19, %v407_v21  ;;  %v1876_v39 = vpop.f32.mrb[1].mxu1 }
 0x104   :  { %v579_v40 = vrot.slane %v1477_v19, %v426_v24  ;;  %v294_v41 = vrot.slane %v137_v22, %v293_v17  ;;  %v332_v42 = vrot.slane %v137_v22, %v331_v29  ;;  %v351_v43 = vrot.slane %v137_v22, %v350_v32 }
 0x105   :  { %v370_v44 = vrot.slane %v137_v22, %v369_v34 }
 0x107   :  { %471 = vbcast.lane.b32.xlu1 %v465_v28, 264  ;;  %467 = vbcast.lane.b32.xlu0 %v465_v28, 256 }
 0x10b   :  { %490 = vbcast.lane.b32.xlu1 %v484_v31, 264  ;;  %486 = vbcast.lane.b32.xlu0 %v484_v31, 256 }
 0x10f   :  { %475 = vbcast.lane.b32.xlu1 %v465_v28, 272  ;;  %456 = vbcast.lane.b32.xlu0 %v446_v23, 272 }
 0x113   :  { %509 = vbcast.lane.b32.xlu1 %v503_v33, 264  ;;  %505 = vbcast.lane.b32.xlu0 %v503_v33, 256 }
 0x117   :  { %494 = vbcast.lane.b32.xlu1 %v484_v31, 272  ;;  %524 = vbcast.lane.b32.xlu0 %v522_v35, 256 }
 0x11b   :  { %528 = vbcast.lane.b32.xlu1 %v522_v35, 264  ;;  %479 = vbcast.lane.b32.xlu0 %v465_v28, 280 }
 0x11f   :  { %460 = vbcast.lane.b32.xlu1 %v446_v23, 280  ;;  %543 = vbcast.lane.b32.xlu0 %v541_v37, 256 }
 0x123   :  { %513 = vbcast.lane.b32.xlu1 %v503_v33, 272  ;;  %498 = vbcast.lane.b32.xlu0 %v484_v31, 280 }
 0x127   :  { %547 = vbcast.lane.b32.xlu1 %v541_v37, 264  ;;  %562 = vbcast.lane.b32.xlu0 %v560_v38, 256 }
 0x12b   :  { %532 = vbcast.lane.b32.xlu1 %v522_v35, 272  ;;  %517 = vbcast.lane.b32.xlu0 %v503_v33, 280 }
 0x12f   :  { %566 = vbcast.lane.b32.xlu1 %v560_v38, 264  ;;  %581 = vbcast.lane.b32.xlu0 %v579_v40, 256 }
 0x133   :  { %551 = vbcast.lane.b32.xlu1 %v541_v37, 272  ;;  %570 = vbcast.lane.b32.xlu0 %v560_v38, 272 }
 0x137   :  { %585 = vbcast.lane.b32.xlu1 %v579_v40, 264  ;;  %589 = vbcast.lane.b32.xlu0 %v579_v40, 272 }
 0x13b   :  { %536 = vbcast.lane.b32.xlu1 %v522_v35, 280  ;;  %296 = vbcast.lane.b32.xlu0 %v294_v41, 256 }
 0x13f   :  { %555 = vbcast.lane.b32.xlu1 %v541_v37, 280  ;;  %300 = vbcast.lane.b32.xlu0 %v294_v41, 264 }
 0x143   :  { %574 = vbcast.lane.b32.xlu1 %v560_v38, 280  ;;  %334 = vbcast.lane.b32.xlu0 %v332_v42, 256 }
 0x147   :  { %593 = vbcast.lane.b32.xlu1 %v579_v40, 280  ;;  %304 = vbcast.lane.b32.xlu0 %v294_v41, 272 }
 0x14b   :  { %315 = vbcast.lane.b32.xlu1 %v1863_v25, 256  ;;  %353 = vbcast.lane.b32.xlu0 %v351_v43, 256 }
 0x14f   :  { %319 = vbcast.lane.b32.xlu1 %v1863_v25, 264  ;;  %342 = vbcast.lane.b32.xlu0 %v332_v42, 272 }
 0x153   :  { %338 = vbcast.lane.b32.xlu1 %v332_v42, 264  ;;  %376 = vbcast.lane.b32.xlu0 %v370_v44, 264 }
 0x157   :  { %323 = vbcast.lane.b32.xlu1 %v1863_v25, 272  ;;  %308 = vbcast.lane.b32.xlu0 %v294_v41, 280 }
 0x15b   :  { %357 = vbcast.lane.b32.xlu1 %v351_v43, 264  ;;  %361 = vbcast.lane.b32.xlu0 %v351_v43, 272 }
 0x15f   :  { %372 = vbcast.lane.b32.xlu1 %v370_v44, 256  ;;  %395 = vbcast.lane.b32.xlu0 %v1865_v26, 264 }
 0x163   :  { %327 = vbcast.lane.b32.xlu1 %v1863_v25, 280  ;;  %346 = vbcast.lane.b32.xlu0 %v332_v42, 280 }
 0x167   :  { %391 = vbcast.lane.b32.xlu1 %v1865_v26, 256  ;;  %410 = vbcast.lane.b32.xlu0 %v1867_v27, 256 }
 0x16b   :  { %380 = vbcast.lane.b32.xlu1 %v370_v44, 272  ;;  %365 = vbcast.lane.b32.xlu0 %v351_v43, 280 }
 0x16f   :  { %414 = vbcast.lane.b32.xlu1 %v1867_v27, 264  ;;  %429 = vbcast.lane.b32.xlu0 %v1870_v30, 256 }
 0x173   :  { %399 = vbcast.lane.b32.xlu1 %v1865_v26, 272  ;;  %418 = vbcast.lane.b32.xlu0 %v1867_v27, 272 }
 0x175   :  { %v1897_v49 = vpop.permute.xlu1 %452  ;;  %v1899_v50 = vpop.permute.xlu0 %448 }
 0x177   :  { %433 = vbcast.lane.b32.xlu1 %v1870_v30, 264  ;;  %437 = vbcast.lane.b32.xlu0 %v1870_v30, 272 }
 0x179   :  { %v1903_v51 = vpop.permute.xlu1 %471  ;;  %v1905_v52 = vpop.permute.xlu0 %467 }
 0x17b   :  { %384 = vbcast.lane.b32.xlu1 %v370_v44, 280  ;;  %422 = vbcast.lane.b32.xlu0 %v1867_v27, 280 }
 0x17d   :  { %v1908_v53 = vpop.permute.xlu1 %490  ;;  %v1910_v54 = vpop.permute.xlu0 %486 }
 0x17f   :  { %403 = vbcast.lane.b32.xlu1 %v1865_v26, 280  ;;  %441 = vbcast.lane.b32.xlu0 %v1870_v30, 280 }
 0x181   :  { %v1914_v55 = vpop.permute.xlu1 %475  ;;  %v1916_v56 = vpop.permute.xlu0 %456 }
 0x185   :  { %v1918_v57 = vpop.permute.xlu1 %509  ;;  %v506_v58 = vpop.permute.xlu0 %505 }
 0x189   :  { %v1920_v59 = vpop.permute.xlu1 %494  ;;  %v525_v60 = vpop.permute.xlu0 %524 }
 0x18d   :  { %v1922_v61 = vpop.permute.xlu0 %479  ;;  %v1924_v62 = vpop.permute.xlu1 %528 }
 0x191   :  { %v544_v63 = vpop.permute.xlu0 %543  ;;  %v1926_v0 = vpop.permute.xlu1 %460 }
 0x195   :  { %v1928_v1 = vpop.permute.xlu0 %498  ;;  %v1930_v3 = vpop.permute.xlu1 %513 }
 0x199   :  { %v563_v2 = vpop.permute.xlu0 %562  ;;  %v1935_v5 = vpop.permute.xlu1 %547 }
 0x19d   :  { %v1932_v4 = vpop.permute.xlu0 %517  ;;  %259 = vxpose.xlu0.b32.start.end [1/1] (short) (narrow) %v1874_v36, 32  ;;  %v1937_v7 = vpop.permute.xlu1 %532 }
 0x1a1   :  { %v582_v6 = vpop.permute.xlu0 %581  ;;  %v567_v9 = vpop.permute.xlu1 %566 }
 0x1a5   :  { %v1939_v8 = vpop.permute.xlu0 %570  ;;  %v1944_v11 = vpop.permute.xlu1 %551 }
 0x1a8   :  { %227 = vxpose.xlu1.b32.start.end [1/1] (short) (narrow) %v1876_v39, 32 }
 0x1a9   :  { %v1942_v10 = vpop.permute.xlu0 %589  ;;  %v586_v13 = vpop.permute.xlu1 %585 }
 0x1ad   :  { %v1946_v12 = vpop.permute.xlu0 %296  ;;  %v1950_v15 = vpop.permute.xlu1 %536 }
 0x1b1   :  { %v1948_v14 = vpop.permute.xlu0 %300  ;;  %v1954_v17 = vpop.permute.xlu1 %555 }
 0x1b5   :  { %v1952_v16 = vpop.permute.xlu0 %334  ;;  %v1958_v19 = vpop.permute.xlu1 %574 }
 0x1b9   :  { %v1956_v18 = vpop.permute.xlu0 %304  ;;  %v1962_v21 = vpop.permute.xlu1 %593 }
 0x1bd   :  { %v1960_v20 = vpop.permute.xlu0 %353  ;;  %v1966_v23 = vpop.permute.xlu1 %315 }
 0x1c1   :  { %v1964_v22 = vpop.permute.xlu0 %342  ;;  %v1970_v25 = vpop.permute.xlu1 %319 }
 0x1c2   :  { %2658 = vst [vmem:[#allocation14_spill] sm:$0xff] %v1964_v22 }
 0x1c5   :  { %v1968_v24 = vpop.permute.xlu0 %376  ;;  %v1974_v27 = vpop.permute.xlu1 %338 }
 0x1c9   :  { %v1972_v26 = vpop.permute.xlu0 %308  ;;  %v1978_v29 = vpop.permute.xlu1 %323 }
 0x1ca   :  { %2659 = vst [vmem:[#allocation15_spill] sm:$0xff] %v1972_v26 }
 0x1cd   :  { %v1976_v28 = vpop.permute.xlu0 %361  ;;  %v1982_v31 = vpop.permute.xlu1 %357 }
 0x1ce   :  { %2660 = vst [vmem:[#allocation16_spill] sm:$0xff] %v1976_v28 }
 0x1d1   :  { %v1980_v30 = vpop.permute.xlu0 %395  ;;  %v373_v33 = vpop.permute.xlu1 %372 }
 0x1d5   :  { %v1984_v32 = vpop.permute.xlu0 %346  ;;  %v1988_v35 = vpop.permute.xlu1 %327 }
 0x1d6   :  { %2661 = vst [vmem:[#allocation17_spill] sm:$0xff] %v1984_v32  ;;  %2662 = vst [vmem:[#allocation18_spill] sm:$0xff] %v1988_v35 }
 0x1d9   :  { %v1986_v34 = vpop.permute.xlu0 %410  ;;  %v392_v37 = vpop.permute.xlu1 %391 }
 0x1dd   :  { %v1990_v36 = vpop.permute.xlu0 %365  ;;  %v1992_v39 = vpop.permute.xlu1 %380 }
 0x1de   :  { %2663 = vst [vmem:[#allocation19_spill] sm:$0xff] %v1990_v36  ;;  %2664 = vst [vmem:[#allocation20_spill] sm:$0xff] %v1992_v39 }
 0x1e1   :  { %v430_v38 = vpop.permute.xlu0 %429  ;;  %v1996_v41 = vpop.permute.xlu1 %414 }
 0x1e5   :  { %v1994_v40 = vpop.permute.xlu0 %418  ;;  %v2000_v43 = vpop.permute.xlu1 %399 }
 0x1e6   :  { %2665 = vst [vmem:[#allocation21_spill] sm:$0xff] %v1994_v40  ;;  %2667 = vst [vmem:[#allocation23_spill] sm:$0xff] %v2000_v43 }
 0x1e9   :  { %v1998_v42 = vpop.permute.xlu0 %437  ;;  %v2004_v48 = vpop.permute.xlu1 %433 }
 0x1ea   :  { %2666 = vst [vmem:[#allocation22_spill] sm:$0xff] %v1998_v42 }
 0x1ed   :  { %v2002_v44 = vpop.permute.xlu0 %422  ;;  %v2008_v36 = vpop.permute.xlu1 %384 }
 0x1ee   :  { %2668 = vst [vmem:[#allocation24_spill] sm:$0xff] %v2002_v44 }
 0x1f1   :  { %v2006_v47 = vpop.permute.xlu0 %441  ;;  %v2014_v22 = vpop.permute.xlu1 %403 }
 0x1f2   :  { %2669 = vst [vmem:[#allocation25_spill] sm:$0xff] %v2006_v47 }
 0x21d   :  { %v275_v32 = vpop.trf.xlu0 }
 0x21e   :  { %v627_v35 = vadd.f32 %v1899_v50, %v275_v32  ;;  %v631_v26 = vadd.f32 %v1905_v52, %v275_v32  ;;  %v635_v40 = vadd.f32 %v1910_v54, %v275_v32  ;;  %v639_v39 = vadd.f32 %v506_v58, %v275_v32 }
 0x21f   :  { %v643_v45 = vadd.f32 %v525_v60, %v275_v32  ;;  %v647_v42 = vadd.f32 %v544_v63, %v275_v32  ;;  %v651_v44 = vadd.f32 %v563_v2, %v275_v32  ;;  %v655_v28 = vadd.f32 %v582_v6, %v275_v32 }
 0x220   :  { %1513 = vtanh.f32 %v627_v35 }
 0x221   :  { %1515 = vtanh.f32 %v631_v26  ;;  %v276_v43 = vpop.trf.xlu0 }
 0x222   :  { %1517 = vtanh.f32 %v635_v40  ;;  %v628_v47 = vadd.f32 %v1897_v49, %v276_v43  ;;  %v632_v50 = vadd.f32 %v1903_v51, %v276_v43  ;;  %v636_v52 = vadd.f32 %v1908_v53, %v276_v43 }
 0x223   :  { %1519 = vtanh.f32 %v639_v39  ;;  %v640_v54 = vadd.f32 %v1918_v57, %v276_v43  ;;  %v644_v58 = vadd.f32 %v1924_v62, %v276_v43  ;;  %v648_v60 = vadd.f32 %v1935_v5, %v276_v43 }
 0x224   :  { %1521 = vtanh.f32 %v643_v45  ;;  %v652_v63 = vadd.f32 %v567_v9, %v276_v43  ;;  %v656_v6 = vadd.f32 %v586_v13, %v276_v43 }
 0x225   :  { %1523 = vtanh.f32 %v647_v42  ;;  %v277_v2 = vpop.trf.xlu0 }
 0x226   :  { %1525 = vtanh.f32 %v651_v44  ;;  %v629_v49 = vadd.f32 %v1916_v56, %v277_v2  ;;  %v633_v26 = vadd.f32 %v1914_v55, %v277_v2  ;;  %v637_v45 = vadd.f32 %v1920_v59, %v277_v2 }
 0x227   :  { %1527 = vtanh.f32 %v655_v28  ;;  %v641_v51 = vadd.f32 %v1930_v3, %v277_v2  ;;  %v2026_v53 = vadd.f32 %v1937_v7, %v277_v2  ;;  %v2029_v57 = vadd.f32 %v1944_v11, %v277_v2 }
 0x228   :  { %1529 = vtanh.f32 %v628_v47  ;;  %v2032_v62 = vadd.f32 %v1939_v8, %v277_v2  ;;  %v2035_v5 = vadd.f32 %v1942_v10, %v277_v2  ;;  %v243_v56 = vpop.trf.xlu1 }
 0x229   :  { %1531 = vtanh.f32 %v632_v50  ;;  %v2038_v55 = vadd.f32 %v1946_v12, %v243_v56  ;;  %v2041_v59 = vadd.f32 %v1966_v23, %v243_v56  ;;  %v2044_v3 = vadd.f32 %v1952_v16, %v243_v56  ;;  %v278_v47 = vpop.trf.xlu0 }
 0x22a   :  { %v1514_v7 = vpop.eup %1513  ;;  %1533 = vtanh.f32 %v636_v52  ;;  %v2047_v8 = vadd.f32 %v1960_v20, %v243_v56  ;;  %v2049_v9 = vadd.f32 %v373_v33, %v243_v56  ;;  %v2051_v10 = vadd.f32 %v392_v37, %v243_v56 }
 0x22b   :  { %v1516_v11 = vpop.eup %1515  ;;  %v2054_v12 = vmul.f32 %v1514_v7, %v1887_v46  ;;  %1535 = vtanh.f32 %v640_v54  ;;  %v2057_v13 = vadd.f32 %v1986_v34, %v243_v56  ;;  %v2059_v16 = vadd.f32 %v430_v38, %v243_v56  ;;  %v2671_v54 = vld [vmem:[#allocation16_spill] sm:$0xff]  ;;  %v2676_v56 = vld [vmem:[#allocation22_spill] sm:$0xff] }
 0x22c   :  { %v2061_v23 = vpop.eup %1517  ;;  %v2064_v28 = vmul.f32 %v1516_v11, %v1887_v46  ;;  %1537 = vtanh.f32 %v644_v58  ;;  %v2067_v20 = vadd.f32 %v1926_v0, %v278_v47  ;;  %v2070_v32 = vadd.f32 %v1922_v61, %v278_v47  ;;  %v244_v33 = vpop.trf.xlu1 }
 0x22d   :  { %v1520_v35 = vpop.eup %1519  ;;  %1539 = vtanh.f32 %v648_v60  ;;  %v2073_v34 = vadd.f32 %v1928_v1, %v278_v47  ;;  %v2076_v37 = vadd.f32 %v1932_v4, %v278_v47  ;;  %v2079_v38 = vadd.f32 %v1950_v15, %v278_v47  ;;  %v2672_v60 = vld [vmem:[#allocation11_spill] sm:$0xff] }
 0x22e   :  { %v1522_v39 = vpop.eup %1521  ;;  %1541 = vtanh.f32 %v652_v63  ;;  %v2082_v0 = vadd.f32 %v1954_v17, %v278_v47  ;;  %v2085_v61 = vadd.f32 %v1958_v19, %v278_v47  ;;  %v2088_v40 = vadd.f32 %v1962_v21, %v278_v47 }
 0x22f   :  { %v1524_v42 = vpop.eup %1523  ;;  %1543 = vtanh.f32 %v656_v6  ;;  %v2091_v1 = vadd.f32 %v1948_v14, %v244_v33  ;;  %v2094_v4 = vadd.f32 %v1970_v25, %v244_v33  ;;  %v2097_v15 = vadd.f32 %v1974_v27, %v244_v33 }
 0x230   :  { %v1526_v43 = vpop.eup %1525  ;;  %1545 = vtanh.f32 %v629_v49  ;;  %v2100_v17 = vadd.f32 %v1982_v31, %v244_v33  ;;  %v2103_v19 = vadd.f32 %v1968_v24, %v244_v33  ;;  %v2106_v21 = vadd.f32 %v1980_v30, %v244_v33  ;;  %v245_v44 = vpop.trf.xlu1  ;;  %v2670_v30 = vld [vmem:[#allocation14_spill] sm:$0xff] }
 0x231   :  { %v1528_v14 = vpop.eup %1527  ;;  %1547 = vtanh.f32 %v633_v26  ;;  %v2109_v25 = vadd.f32 %v1996_v41, %v244_v33  ;;  %v2112_v27 = vadd.f32 %v2004_v48, %v244_v33  ;;  %v2115_v50 = vadd.f32 %v1956_v18, %v245_v44  ;;  %v2673_v48 = vld [vmem:[#allocation20_spill] sm:$0xff]  ;;  %v2674_v18 = vld [vmem:[#allocation23_spill] sm:$0xff]  ;;  %v2675_v26 = vld [vmem:[#allocation21_spill] sm:$0xff] }
 0x232   :  { %v1530_v31 = vpop.eup %1529  ;;  %1549 = vtanh.f32 %v637_v45  ;;  %v2118_v24 = vadd.f32 %v1978_v29, %v245_v44  ;;  %v2121_v52 = vadd.f32 %v2670_v30, %v245_v44  ;;  %v2124_v58 = vadd.f32 %v2671_v54, %v245_v44  ;;  %v2679_v54 = vld [vmem:[#allocation17_spill] sm:$0xff] }
 0x233   :  { %v1532_v41 = vpop.eup %1531  ;;  %v776_v63 = vmul.f32 %v1530_v31, %v2672_v60  ;;  %1551 = vtanh.f32 %v641_v51  ;;  %v2128_v2 = vadd.f32 %v2673_v48, %v245_v44  ;;  %v2131_v6 = vadd.f32 %v2674_v18, %v245_v44  ;;  %v2677_v51 = vld [vmem:[#allocation15_spill] sm:$0xff]  ;;  %v2678_v31 = vld [vmem:[#allocation18_spill] sm:$0xff] }
 0x234   :  { %v1534_v49 = vpop.eup %1533  ;;  %v780_v29 = vmul.f32 %v1532_v41, %v2672_v60  ;;  %1553 = vtanh.f32 %v2026_v53  ;;  %v2136_v45 = vadd.f32 %v2675_v26, %v245_v44  ;;  %v2139_v47 = vadd.f32 %v2676_v56, %v245_v44  ;;  %v246_v7 = vpop.trf.xlu1  ;;  %v2680_v48 = vld [vmem:[#allocation19_spill] sm:$0xff]  ;;  %v2683_v56 = vld [vmem:[#allocation24_spill] sm:$0xff] }
 0x235   :  { %v1536_v11 = vpop.eup %1535  ;;  %1555 = vtanh.f32 %v2029_v57  ;;  %v2143_v33 = vadd.f32 %v2677_v51, %v246_v7  ;;  %v2146_v30 = vadd.f32 %v2678_v31, %v246_v7  ;;  %v2149_v41 = vadd.f32 %v2679_v54, %v246_v7  ;;  %v2684_v31 = vld [vmem:[#allocation25_spill] sm:$0xff] }
 0x236   :  { %v1538_v53 = vpop.eup %1537  ;;  %1557 = vtanh.f32 %v2032_v62  ;;  %v2153_v18 = vadd.f32 %v2680_v48, %v246_v7  ;;  %v2156_v44 = vadd.f32 %v2008_v36, %v246_v7  ;;  %v2159_v57 = vadd.f32 %v2014_v22, %v246_v7 }
 0x237   :  { %v1540_v26 = vpop.eup %1539  ;;  %1559 = vtanh.f32 %v2035_v5  ;;  %v2163_v51 = vadd.f32 %v2683_v56, %v246_v7  ;;  %v2166_v54 = vadd.f32 %v2684_v31, %v246_v7  ;;  %v783_v62 = vmul.f32 %v2061_v23, %v1887_v46 }
 0x238   :  { %2681 = vst [vmem:[#allocation14_spill] sm:$0xff] %v2156_v44  ;;  %2682 = vst [vmem:[#allocation16_spill] sm:$0xff] %v2159_v57  ;;  %v1542_v48 = vpop.eup %1541  ;;  %1561 = vtanh.f32 %v2038_v55  ;;  %v784_v36 = vmul.f32 %v1534_v49, %v2672_v60  ;;  %v787_v22 = vmul.f32 %v1520_v35, %v1887_v46  ;;  %v788_v57 = vmul.f32 %v1536_v11, %v2672_v60 }
 0x239   :  { %2685 = vst [vmem:[#allocation11_spill] sm:$0xff] %v2166_v54  ;;  %v1544_v44 = vpop.eup %1543  ;;  %1563 = vtanh.f32 %v2041_v59  ;;  %v791_v5 = vmul.f32 %v1522_v39, %v1887_v46  ;;  %v792_v7 = vmul.f32 %v1538_v53, %v2672_v60  ;;  %v2178_v56 = vmul.f32 %v1524_v42, %v1887_v46  ;;  %v2686_v39 = vld [vmem:[#allocation12_spill] sm:$0xff] }
 0x23a   :  { %v1546_v23 = vpop.eup %1545  ;;  %1565 = vtanh.f32 %v2044_v3  ;;  %v2182_v55 = vmul.f32 %v1540_v26, %v2672_v60  ;;  %v2185_v35 = vmul.f32 %v1526_v43, %v1887_v46  ;;  %v2188_v49 = vmul.f32 %v1542_v48, %v2672_v60 }
 0x23b   :  { %v1548_v59 = vpop.eup %1547  ;;  %1567 = vtanh.f32 %v2047_v8  ;;  %v777_v11 = vmul.f32 %v1546_v23, %v2686_v39  ;;  %v2193_v42 = vmul.f32 %v1528_v14, %v1887_v46  ;;  %v2196_v53 = vmul.f32 %v1544_v44, %v2672_v60 }
 0x23c   :  { %v1550_v3 = vpop.eup %1549  ;;  %1569 = vtanh.f32 %v2049_v9  ;;  %v781_v43 = vmul.f32 %v1548_v59, %v2686_v39  ;;  %v912_v26 = vsel %vm807_vm1, %v2054_v12, 0.0  ;;  %v913_v31 = vsel %vm807_vm1, %v776_v63, 0.0 }
 0x23d   :  { %v1552_v48 = vpop.eup %1551  ;;  %1571 = vtanh.f32 %v2051_v10  ;;  %v785_v8 = vmul.f32 %v1550_v3, %v2686_v39  ;;  %v914_v14 = vadd.f32 %v913_v31, %v912_v26  ;;  %v915_v23 = vsel %vm807_vm1, %v777_v11, 0.0 }
 0x23e   :  { %v1554_v44 = vpop.eup %1553  ;;  %1573 = vtanh.f32 %v2057_v13  ;;  %v789_v9 = vmul.f32 %v1552_v48, %v2686_v39  ;;  %v925_v59 = vsel %vm807_vm1, %v2064_v28, 0.0  ;;  %v926_v12 = vsel %vm807_vm1, %v780_v29, 0.0 }
 0x23f   :  { %v1556_v54 = vpop.eup %1555  ;;  %1575 = vtanh.f32 %v2059_v16  ;;  %v793_v10 = vmul.f32 %v1554_v44, %v2686_v39  ;;  %v2213_v63 = vadd.f32 %v915_v23, %v914_v14  ;;  %v927_v3 = vadd.f32 %v926_v12, %v925_v59 }
 0x240   :  { %v1558_v26 = vpop.eup %1557  ;;  %1577 = vtanh.f32 %v2067_v20  ;;  %v797_v13 = vmul.f32 %v1556_v54, %v2686_v39  ;;  %v928_v11 = vsel %vm807_vm1, %v781_v43, 0.0  ;;  %v938_v31 = vsel %vm807_vm1, %v783_v62, 0.0 }
 0x241   :  { %v1560_v28 = vpop.eup %1559  ;;  %1579 = vtanh.f32 %v2070_v32  ;;  %v801_v29 = vmul.f32 %v1558_v26, %v2686_v39  ;;  %v2221_v16 = vadd.f32 %v928_v11, %v927_v3  ;;  %v939_v48 = vsel %vm807_vm1, %v784_v36, 0.0 }
 0x242   :  { %v1562_v14 = vpop.eup %1561  ;;  %1581 = vtanh.f32 %v2073_v34  ;;  %v805_v20 = vmul.f32 %v1560_v28, %v2686_v39  ;;  %v940_v23 = vadd.f32 %v939_v48, %v938_v31  ;;  %v941_v54 = vsel %vm807_vm1, %v785_v8, 0.0 }
 0x243   :  { %v1564_v43 = vpop.eup %1563  ;;  %v2228_v62 = vmul.f32 %v1562_v14, %v1887_v46  ;;  %1583 = vtanh.f32 %v2076_v37  ;;  %v951_v32 = vsel %vm807_vm1, %v787_v22, 0.0  ;;  %v952_v44 = vsel %vm807_vm1, %v788_v57, 0.0 }
 0x244   :  { %v1566_v59 = vpop.eup %1565  ;;  %v2234_v36 = vmul.f32 %v1564_v43, %v1887_v46  ;;  %1585 = vtanh.f32 %v2079_v38  ;;  %v942_v34 = vadd.f32 %v941_v54, %v940_v23  ;;  %v953_v12 = vadd.f32 %v952_v44, %v951_v32 }
 0x245   :  { %v2237_v3 = vpop.eup %1567  ;;  %1587 = vtanh.f32 %v2082_v0  ;;  %v954_v8 = vsel %vm807_vm1, %v789_v9, 0.0  ;;  %v964_v37 = vsel %vm807_vm1, %v791_v5, 0.0  ;;  %v965_v22 = vsel %vm807_vm1, %v792_v7, 0.0 }
 0x246   :  { %v2243_v26 = vpop.eup %1569  ;;  %1589 = vtanh.f32 %v2085_v61  ;;  %v2246_v57 = vadd.f32 %v954_v8, %v953_v12  ;;  %v966_v11 = vadd.f32 %v965_v22, %v964_v37  ;;  %v967_v38 = vsel %vm807_vm1, %v793_v10, 0.0 }
 0x247   :  { %v2249_v31 = vpop.eup %1571  ;;  %1591 = vtanh.f32 %v2088_v40  ;;  %v977_v0 = vsel %vm807_vm1, %v2178_v56, 0.0  ;;  %v978_v5 = vsel %vm807_vm1, %v2182_v55, 0.0  ;;  %v980_v7 = vsel %vm807_vm1, %v797_v13, 0.0 }
 0x248   :  { %v2257_v9 = vpop.eup %1573  ;;  %1593 = vtanh.f32 %v2091_v1  ;;  %v2260_v61 = vadd.f32 %v967_v38, %v966_v11  ;;  %v979_v28 = vadd.f32 %v978_v5, %v977_v0  ;;  %v990_v10 = vsel %vm807_vm1, %v2185_v35, 0.0 }
 0x249   :  { %v2264_v48 = vpop.eup %1575  ;;  %1595 = vtanh.f32 %v2094_v4  ;;  %v991_v40 = vsel %vm807_vm1, %v2188_v49, 0.0  ;;  %v993_v56 = vsel %vm807_vm1, %v801_v29, 0.0  ;;  %v1003_v55 = vsel %vm807_vm1, %v2193_v42, 0.0  ;;  %v2687_v4 = vld [vmem:[#allocation13_spill] sm:$0xff] }
 0x24a   :  { %v1578_v13 = vpop.eup %1577  ;;  %1597 = vtanh.f32 %v2097_v15  ;;  %v2273_v1 = vadd.f32 %v980_v7, %v979_v28  ;;  %v992_v14 = vadd.f32 %v991_v40, %v990_v10  ;;  %v1004_v35 = vsel %vm807_vm1, %v2196_v53, 0.0 }
 0x24b   :  { %v1580_v23 = vpop.eup %1579  ;;  %1599 = vtanh.f32 %v2100_v17  ;;  %v778_v54 = vmul.f32 %v1578_v13, %v2687_v4  ;;  %v1005_v49 = vadd.f32 %v1004_v35, %v1003_v55  ;;  %v1006_v29 = vsel %vm807_vm1, %v805_v20, 0.0 }
 0x24c   :  { %v1582_v43 = vpop.eup %1581  ;;  %1601 = vtanh.f32 %v2103_v19  ;;  %v782_v42 = vmul.f32 %v1580_v23, %v2687_v4  ;;  %v2282_v15 = vadd.f32 %v993_v56, %v992_v14  ;;  %v2285_v32 = vmul.f32 %v1566_v59, %v1887_v46 }
 0x24d   :  { %v1584_v44 = vpop.eup %1583  ;;  %1603 = vtanh.f32 %v2106_v21  ;;  %v786_v17 = vmul.f32 %v1582_v43, %v2687_v4  ;;  %v917_v53 = vsel %vm807_vm1, %v778_v54, 0.0  ;;  %v2290_v12 = vadd.f32 %v1006_v29, %v1005_v49 }
 0x24e   :  { %v1586_v20 = vpop.eup %1585  ;;  %1605 = vtanh.f32 %v2109_v25  ;;  %v790_v19 = vmul.f32 %v1584_v44, %v2687_v4  ;;  %v918_v8 = vadd.f32 %v917_v53, %v2213_v63  ;;  %v930_v37 = vsel %vm807_vm1, %v782_v42, 0.0 }
 0x24f   :  { %v1588_v59 = vpop.eup %1587  ;;  %1607 = vtanh.f32 %v2112_v27  ;;  %v794_v21 = vmul.f32 %v1586_v20, %v2687_v4  ;;  %v931_v22 = vadd.f32 %v930_v37, %v2221_v16  ;;  %v943_v11 = vsel %vm807_vm1, %v786_v17, 0.0 }
 0x250   :  { %v1590_v38 = vpop.eup %1589  ;;  %1609 = vtanh.f32 %v2115_v50  ;;  %v798_v25 = vmul.f32 %v1588_v59, %v2687_v4  ;;  %v919_v0 = vrot.slane %v918_v8, 4  ;;  %v944_v5 = vadd.f32 %v943_v11, %v942_v34 }
 0x251   :  { %v1592_v7 = vpop.eup %1591  ;;  %1611 = vtanh.f32 %v2118_v24  ;;  %v802_v63 = vmul.f32 %v1590_v38, %v2687_v4  ;;  %v932_v28 = vrot.slane %v931_v22, 4  ;;  %v956_v27 = vsel %vm807_vm1, %v790_v19, 0.0 }
 0x252   :  { %v1594_v10 = vpop.eup %1593  ;;  %1613 = vtanh.f32 %v2121_v52  ;;  %v2307_v16 = vmul.f32 %v1592_v7, %v2687_v4  ;;  %v920_v40 = vadd.f32 %v919_v0, %v918_v8  ;;  %v945_v50 = vrot.slane %v944_v5, 4 }
 0x253   :  { %v1596_v56 = vpop.eup %1595  ;;  %v2310_v55 = vmul.f32 %v1594_v10, %v2672_v60  ;;  %1615 = vtanh.f32 %v2124_v58  ;;  %v933_v24 = vadd.f32 %v932_v28, %v931_v22  ;;  %v957_v34 = vadd.f32 %v956_v27, %v2246_v57  ;;  %v2689_v27 = vld [vmem:[#allocation16_spill] sm:$0xff] }
 0x254   :  { %v2314_v13 = vpop.eup %1597  ;;  %v2317_v14 = vmul.f32 %v1596_v56, %v2672_v60  ;;  %1617 = vtanh.f32 %v2128_v2  ;;  %v921_v52 = vrot.slane %v920_v40, 2  ;;  %v946_v35 = vadd.f32 %v945_v50, %v944_v5  ;;  %v2688_v5 = vld [vmem:[#allocation14_spill] sm:$0xff] }
 0x255   :  { %v2320_v23 = vpop.eup %1599  ;;  %1619 = vtanh.f32 %v2131_v6  ;;  %v934_v54 = vrot.slane %v933_v24, 2  ;;  %v958_v49 = vrot.slane %v957_v34, 4  ;;  %v969_v58 = vsel %vm807_vm1, %v794_v21, 0.0 }
 0x256   :  { %v2324_v57 = vpop.eup %1601  ;;  %1621 = vtanh.f32 %v2136_v45  ;;  %v922_v29 = vadd.f32 %v921_v52, %v920_v40  ;;  %v947_v43 = vrot.slane %v946_v35, 2  ;;  %v970_v42 = vadd.f32 %v969_v58, %v2260_v61  ;;  %v2690_v52 = vld [vmem:[#allocation11_spill] sm:$0xff] }
 0x257   :  { %v2328_v2 = vpop.eup %1603  ;;  %1623 = vtanh.f32 %v2139_v47  ;;  %v935_v44 = vadd.f32 %v934_v54, %v933_v24  ;;  %v959_v6 = vadd.f32 %v958_v49, %v957_v34  ;;  %v982_v17 = vsel %vm807_vm1, %v798_v25, 0.0 }
 0x258   :  { %v2332_v53 = vpop.eup %1605  ;;  %1625 = vtanh.f32 %v2143_v33  ;;  %v923_v20 = vrot.slane %v922_v29, 1  ;;  %v948_v19 = vadd.f32 %v947_v43, %v946_v35  ;;  %v971_v45 = vrot.slane %v970_v42, 4 }
 0x259   :  { %v2335_v8 = vpop.eup %1607  ;;  %1627 = vtanh.f32 %v2146_v30  ;;  %v936_v61 = vrot.slane %v935_v44, 1  ;;  %v960_v37 = vrot.slane %v959_v6, 2  ;;  %v983_v59 = vadd.f32 %v982_v17, %v2273_v1 }
 0x25a   :  { %v1610_v47 = vpop.eup %1609  ;;  %1629 = vtanh.f32 %v2149_v41  ;;  %v2340_v21 = vadd.f32 %v923_v20, %v922_v29  ;;  %v949_v22 = vrot.slane %v948_v19, 1  ;;  %v972_v11 = vadd.f32 %v971_v45, %v970_v42 }
 0x25b   :  { %v1612_v33 = vpop.eup %1611  ;;  %1631 = vtanh.f32 %v2153_v18  ;;  %v2343_v38 = vadd.f32 %v936_v61, %v935_v44  ;;  %v961_v25 = vadd.f32 %v960_v37, %v959_v6  ;;  %v984_v0 = vrot.slane %v983_v59, 4 }
 0x25c   :  { %v1614_v30 = vpop.eup %1613  ;;  %1633 = vtanh.f32 %v2688_v5  ;;  %v2346_v7 = vadd.f32 %v949_v22, %v948_v19  ;;  %v973_v1 = vrot.slane %v972_v11, 2  ;;  %v995_v28 = vsel %vm807_vm1, %v802_v63, 0.0 }
 0x25d   :  { %v1616_v41 = vpop.eup %1615  ;;  %1635 = vtanh.f32 %v2689_v27  ;;  %v962_v10 = vrot.slane %v961_v25, 1  ;;  %v985_v40 = vadd.f32 %v984_v0, %v983_v59  ;;  %v996_v18 = vadd.f32 %v995_v28, %v2282_v15 }
 0x25e   :  { %v1618_v50 = vpop.eup %1617  ;;  %1637 = vtanh.f32 %v2163_v51  ;;  %v974_v56 = vadd.f32 %v973_v1, %v972_v11  ;;  %v1008_v24 = vsel %vm807_vm1, %v2307_v16, 0.0  ;;  %v1046_v34 = vsel %vm1032_vm2, %v2343_v38, %v2340_v21 }
 0x25f   :  { %v1620_v63 = vpop.eup %1619  ;;  %1639 = vtanh.f32 %v2690_v52  ;;  %v2358_v35 = vadd.f32 %v962_v10, %v961_v25  ;;  %v986_v54 = vrot.slane %v985_v40, 2  ;;  %v997_v49 = vrot.slane %v996_v18, 4 }
 0x260   :  { %v1622_v58 = vpop.eup %1621  ;;  %v975_v15 = vrot.slane %v974_v56, 1  ;;  %v1009_v29 = vadd.f32 %v1008_v24, %v2290_v12  ;;  %v1047_v51 = vsel %vm1034_vm3, %v2346_v7, %v1046_v34  ;;  %v745_v16 = vmul.f32 %v1610_v47, %v2686_v39 }
 0x261   :  { %v1624_v43 = vpop.eup %1623  ;;  %v987_v42 = vadd.f32 %v986_v54, %v985_v40  ;;  %v998_v44 = vadd.f32 %v997_v49, %v996_v18  ;;  %v1048_v6 = vsel %vm1036_vm4, %v2358_v35, %v1047_v51  ;;  %v749_v17 = vmul.f32 %v1612_v33, %v2686_v39 }
 0x262   :  { %v1626_v20 = vpop.eup %1625  ;;  %v2367_v19 = vadd.f32 %v975_v15, %v974_v56  ;;  %v1010_v45 = vrot.slane %v1009_v29, 4  ;;  %v752_v12 = vmul.f32 %v2314_v13, %v2672_v60  ;;  %v2372_v61 = vmul.f32 %v1614_v30, %v2686_v39 }
 0x263   :  { %v1628_v37 = vpop.eup %1627  ;;  %v988_v59 = vrot.slane %v987_v42, 1  ;;  %v999_v47 = vrot.slane %v998_v44, 2  ;;  %v746_v22 = vmul.f32 %v1626_v20, %v2687_v4  ;;  %v755_v11 = vmul.f32 %v2237_v3, %v1887_v46 }
 0x264   :  { %v1630_v33 = vpop.eup %1629  ;;  %v1011_v25 = vadd.f32 %v1010_v45, %v1009_v29  ;;  %v1049_v0 = vsel %vm1038_vm5, %v2367_v19, %v1048_v6  ;;  %v750_v5 = vmul.f32 %v1628_v37, %v2687_v4  ;;  %v756_v13 = vmul.f32 %v2320_v23, %v2672_v60 }
 0x265   :  { %v1632_v30 = vpop.eup %1631  ;;  %v2382_v1 = vadd.f32 %v988_v59, %v987_v42  ;;  %v1000_v28 = vadd.f32 %v999_v47, %v998_v44  ;;  %v754_v27 = vmul.f32 %v1630_v33, %v2687_v4  ;;  %v757_v10 = vmul.f32 %v1616_v41, %v2686_v39 }
 0x266   :  { %v1634_v40 = vpop.eup %1633  ;;  %v1012_v3 = vrot.slane %v1011_v25, 2  ;;  %v758_v18 = vmul.f32 %v1632_v30, %v2687_v4  ;;  %v759_v56 = vmul.f32 %v2243_v26, %v1887_v46  ;;  %v760_v24 = vmul.f32 %v2324_v57, %v2672_v60 }
 0x267   :  { %v1636_v34 = vpop.eup %1635  ;;  %v1001_v23 = vrot.slane %v1000_v28, 1  ;;  %v1050_v52 = vsel %vm1040_vm6, %v2382_v1, %v1049_v0  ;;  %v761_v54 = vmul.f32 %v1618_v50, %v2686_v39  ;;  %v762_v49 = vmul.f32 %v1634_v40, %v2687_v4 }
 0x268   :  { %v1638_v41 = vpop.eup %1637  ;;  %v1013_v15 = vadd.f32 %v1012_v3, %v1011_v25  ;;  %v763_v29 = vmul.f32 %v2249_v31, %v1887_v46  ;;  %v764_v26 = vmul.f32 %v2328_v2, %v2672_v60  ;;  %v765_v51 = vmul.f32 %v1620_v63, %v2686_v39 }
 0x269   :  { %v1640_v57 = vpop.eup %1639  ;;  %v2400_v42 = vadd.f32 %v1001_v23, %v1000_v28  ;;  %v766_v44 = vmul.f32 %v1636_v34, %v2687_v4  ;;  %v2405_v50 = vmul.f32 %v2257_v9, %v1887_v46  ;;  %v2409_v6 = vmul.f32 %v2332_v53, %v2672_v60 }
 0x26a   :  { %v1014_v20 = vrot.slane %v1013_v15, 1  ;;  %v2412_v31 = vmul.f32 %v1622_v58, %v2686_v39  ;;  %v2415_v2 = vmul.f32 %v1638_v41, %v2687_v4  ;;  %v2419_v63 = vmul.f32 %v2264_v48, %v1887_v46 }
 0x26b   :  { %v1051_v45 = vsel %vm1042_vm7, %v2400_v42, %v1050_v52  ;;  %v2425_v9 = vmul.f32 %v2335_v8, %v2672_v60  ;;  %v2428_v53 = vmul.f32 %v1624_v43, %v2686_v39  ;;  %v2431_v58 = vmul.f32 %v1640_v57, %v2687_v4 }
 0x26c   :  { %v2433_v37 = vadd.f32 %v1014_v20, %v1013_v15  ;;  %v808_v59 = vsel %vm807_vm1, %v2228_v62, 0.0  ;;  %v809_v46 = vsel %vm807_vm1, %v2310_v55, 0.0  ;;  %v811_v48 = vsel %vm807_vm1, %v745_v16, 0.0 }
 0x26d   :  { %v810_v47 = vadd.f32 %v809_v46, %v808_v59  ;;  %v813_v60 = vsel %vm807_vm1, %v746_v22, 0.0  ;;  %v821_v39 = vsel %vm807_vm1, %v2234_v36, 0.0  ;;  %v822_v4 = vsel %vm807_vm1, %v2317_v14, 0.0 }
 0x26e   :  { %v1052_v8 = vsel %vm1044_vm8, %v2433_v37, %v1051_v45  ;;  %v823_v43 = vadd.f32 %v822_v4, %v821_v39  ;;  %v824_v62 = vsel %vm807_vm1, %v749_v17, 0.0  ;;  %v826_v33 = vsel %vm807_vm1, %v750_v5, 0.0 }
 0x26f   :  { %v1058_v55 = vsel %vm807_vm1, %v1052_v8, -inf  ;;  %v812_v16 = vadd.f32 %v811_v48, %v810_v47  ;;  %v834_v22 = vsel %vm807_vm1, %v2285_v32, 0.0  ;;  %v835_v25 = vsel %vm807_vm1, %v752_v12, 0.0 }
 0x270   :  { %1059 = vmax.xlane.f32.xlu1 %v1058_v55  ;;  %v825_v36 = vadd.f32 %v824_v62, %v823_v43  ;;  %v836_v0 = vadd.f32 %v835_v25, %v834_v22  ;;  %v837_v14 = vsel %vm807_vm1, %v2372_v61, 0.0  ;;  %v839_v30 = vsel %vm807_vm1, %v754_v27, 0.0 }
 0x271   :  { %v814_v28 = vadd.f32 %v813_v60, %v812_v16  ;;  %v847_v17 = vsel %vm807_vm1, %v755_v11, 0.0  ;;  %v848_v5 = vsel %vm807_vm1, %v756_v13, 0.0  ;;  %v850_v40 = vsel %vm807_vm1, %v757_v10, 0.0 }
 0x272   :  { %v827_v3 = vadd.f32 %v826_v33, %v825_v36  ;;  %v838_v34 = vadd.f32 %v837_v14, %v836_v0  ;;  %v849_v32 = vadd.f32 %v848_v5, %v847_v17  ;;  %v852_v12 = vsel %vm807_vm1, %v758_v18, 0.0 }
 0x273   :  { %v815_v23 = vrot.slane %v814_v28, 4  ;;  %v860_v52 = vsel %vm807_vm1, %v759_v56, 0.0  ;;  %v861_v41 = vsel %vm807_vm1, %v760_v24, 0.0  ;;  %v863_v61 = vsel %vm807_vm1, %v761_v54, 0.0 }
 0x274   :  { %v828_v27 = vrot.slane %v827_v3, 4  ;;  %v840_v15 = vadd.f32 %v839_v30, %v838_v34  ;;  %v851_v57 = vadd.f32 %v850_v40, %v849_v32  ;;  %v862_v11 = vadd.f32 %v861_v41, %v860_v52 }
 0x275   :  { %v816_v20 = vadd.f32 %v815_v23, %v814_v28  ;;  %v865_v13 = vsel %vm807_vm1, %v762_v49, 0.0  ;;  %v873_v10 = vsel %vm807_vm1, %v763_v29, 0.0  ;;  %v874_v45 = vsel %vm807_vm1, %v764_v26, 0.0 }
 0x276   :  { %v829_v59 = vadd.f32 %v828_v27, %v827_v3  ;;  %v841_v18 = vrot.slane %v840_v15, 4  ;;  %v853_v46 = vadd.f32 %v852_v12, %v851_v57  ;;  %v864_v48 = vadd.f32 %v863_v61, %v862_v11 }
 0x277   :  { %v817_v56 = vrot.slane %v816_v20, 2  ;;  %v875_v47 = vadd.f32 %v874_v45, %v873_v10  ;;  %v876_v24 = vsel %vm807_vm1, %v765_v51, 0.0  ;;  %v878_v54 = vsel %vm807_vm1, %v766_v44, 0.0 }
 0x278   :  { %v830_v60 = vrot.slane %v829_v59, 2  ;;  %v842_v39 = vadd.f32 %v841_v18, %v840_v15  ;;  %v854_v4 = vrot.slane %v853_v46, 4  ;;  %v866_v8 = vadd.f32 %v865_v13, %v864_v48 }
 0x279   :  { %v818_v43 = vadd.f32 %v817_v56, %v816_v20  ;;  %v877_v49 = vadd.f32 %v876_v24, %v875_v47  ;;  %v886_v29 = vsel %vm807_vm1, %v2405_v50, 0.0  ;;  %v887_v26 = vsel %vm807_vm1, %v2409_v6, 0.0 }
 0x27a   :  { %v831_v62 = vadd.f32 %v830_v60, %v829_v59  ;;  %v843_v33 = vrot.slane %v842_v39, 2  ;;  %v855_v55 = vadd.f32 %v854_v4, %v853_v46  ;;  %v867_v16 = vrot.slane %v866_v8, 4 }
 0x27b   :  { %v819_v22 = vrot.slane %v818_v43, 1  ;;  %v879_v51 = vadd.f32 %v878_v54, %v877_v49  ;;  %v888_v25 = vadd.f32 %v887_v26, %v886_v29  ;;  %v889_v44 = vsel %vm807_vm1, %v2412_v31, 0.0 }
 0x27c   :  { %v832_v36 = vrot.slane %v831_v62, 1  ;;  %v844_v0 = vadd.f32 %v843_v33, %v842_v39  ;;  %v856_v14 = vrot.slane %v855_v55, 2  ;;  %v868_v30 = vadd.f32 %v867_v16, %v866_v8 }
 0x27d   :  { %v2474_v28 = vadd.f32 %v819_v22, %v818_v43  ;;  %v880_v50 = vrot.slane %v879_v51, 4  ;;  %v890_v17 = vadd.f32 %v889_v44, %v888_v25  ;;  %v891_v6 = vsel %vm807_vm1, %v2415_v2, 0.0 }
 0x27e   :  { %v2478_v5 = vadd.f32 %v832_v36, %v831_v62  ;;  %v845_v40 = vrot.slane %v844_v0, 1  ;;  %v857_v3 = vadd.f32 %v856_v14, %v855_v55  ;;  %v869_v34 = vrot.slane %v868_v30, 2 }
 0x27f   :  { %v881_v32 = vadd.f32 %v880_v50, %v879_v51  ;;  %v892_v12 = vadd.f32 %v891_v6, %v890_v17  ;;  %v899_v31 = vsel %vm807_vm1, %v2419_v63, 0.0  ;;  %v900_v23 = vsel %vm807_vm1, %v2425_v9, 0.0 }
 0x280   :  { %v2484_v52 = vadd.f32 %v845_v40, %v844_v0  ;;  %v858_v41 = vrot.slane %v857_v3, 1  ;;  %v870_v61 = vadd.f32 %v869_v34, %v868_v30  ;;  %v901_v27 = vadd.f32 %v900_v23, %v899_v31 }
 0x281   :  { %v882_v15 = vrot.slane %v881_v32, 2  ;;  %v893_v2 = vrot.slane %v892_v12, 4  ;;  %v902_v57 = vsel %vm807_vm1, %v2428_v53, 0.0  ;;  %v904_v11 = vsel %vm807_vm1, %v2431_v58, 0.0 }
 0x282   :  { %v903_v20 = vadd.f32 %v902_v57, %v901_v27  ;;  %v1033_v63 = vsel %vm1032_vm2, %v2478_v5, %v2474_v28  ;;  %v871_v13 = vrot.slane %v870_v61, 1  ;;  %v2495_v59 = vadd.f32 %v858_v41, %v857_v3 }
 0x283   :  { %v883_v9 = vadd.f32 %v882_v15, %v881_v32  ;;  %v894_v10 = vadd.f32 %v893_v2, %v892_v12  ;;  %v1035_v45 = vsel %vm1034_vm3, %v2484_v52, %v1033_v63 }
 0x284   :  { %v905_v18 = vadd.f32 %v904_v11, %v903_v20  ;;  %v1037_v58 = vsel %vm1036_vm4, %v2495_v59, %v1035_v45  ;;  %v2499_v56 = vadd.f32 %v871_v13, %v870_v61 }
 0x285   :  { %v895_v46 = vrot.slane %v894_v10, 2  ;;  %v884_v48 = vrot.slane %v883_v9, 1 }
 0x286   :  { %v906_v53 = vrot.slane %v905_v18, 4  ;;  %v1039_v60 = vsel %vm1038_vm5, %v2499_v56, %v1037_v58 }
 0x287   :  { %v896_v47 = vadd.f32 %v895_v46, %v894_v10  ;;  %v2503_v39 = vadd.f32 %v884_v48, %v883_v9 }
 0x288   :  { %v907_v24 = vadd.f32 %v906_v53, %v905_v18 }
 0x289   :  { %v897_v54 = vrot.slane %v896_v47, 1  ;;  %v1041_v43 = vsel %vm1040_vm6, %v2503_v39, %v1039_v60 }
 0x28a   :  { %v908_v4 = vrot.slane %v907_v24, 2 }
 0x28b   :  { %v2507_v49 = vadd.f32 %v897_v54, %v896_v47 }
 0x28c   :  { %v909_v8 = vadd.f32 %v908_v4, %v907_v24 }
 0x28d   :  { %v1043_v26 = vsel %vm1042_vm7, %v2507_v49, %v1041_v43 }
 0x28e   :  { %v910_v29 = vrot.slane %v909_v8, 1 }
 0x290   :  { %v2511_v62 = vadd.f32 %v910_v29, %v909_v8 }
 0x292   :  { %v1045_v33 = vsel %vm1044_vm8, %v2511_v62, %v1043_v26 }
 0x293   :  { %v1055_v55 = vsel %vm807_vm1, %v1045_v33, -inf }
 0x294   :  { %1056 = vmax.xlane.f32.xlu0 %v1055_v55 }
 0x2fd   :  { %v1060_v16 = vpop.xlane.xlu1 %1059 }
 0x2fe   :  { %v1070_v22 = vrot.slane %v1060_v16, 1  ;;  %v1071_v51 = vrot.slane %v1060_v16, 2  ;;  %v1072_v25 = vrot.slane %v1060_v16, 3  ;;  %v1073_v44 = vrot.slane %v1060_v16, 4 }
 0x2ff   :  { %v1074_v36 = vrot.slane %v1060_v16, 5  ;;  %v1075_v0 = vrot.slane %v1060_v16, 6  ;;  %v1076_v14 = vrot.slane %v1060_v16, 7  ;;  %v1101_v30 = vsub.f32 %v2340_v21, %v1060_v16 }
 0x300   :  { %v1102_v50 = vsub.f32 %v2343_v38, %v1070_v22  ;;  %v1103_v17 = vsub.f32 %v2346_v7, %v1071_v51  ;;  %v1104_v6 = vsub.f32 %v2358_v35, %v1072_v25  ;;  %v1105_v40 = vsub.f32 %v2367_v19, %v1073_v44 }
 0x301   :  { %v1106_v3 = vsub.f32 %v2382_v1, %v1074_v36  ;;  %v1125_v34 = vmul.f32 1.442695, %v1101_v30  ;;  %v1107_v32 = vsub.f32 %v2400_v42, %v1075_v0  ;;  %v1108_v41 = vsub.f32 %v2433_v37, %v1076_v14 }
 0x302   :  { %v1127_v12 = vmul.f32 1.442695, %v1102_v50  ;;  %v1129_v31 = vmul.f32 1.442695, %v1103_v17  ;;  %v1131_v23 = vmul.f32 1.442695, %v1104_v6 }
 0x303   :  { %1641 = vpow2.f32 %v1125_v34  ;;  %v1133_v21 = vmul.f32 1.442695, %v1105_v40  ;;  %v1135_v38 = vmul.f32 1.442695, %v1106_v3  ;;  %v1137_v7 = vmul.f32 1.442695, %v1107_v32 }
 0x304   :  { %1643 = vpow2.f32 %v1127_v12  ;;  %v1139_v35 = vmul.f32 1.442695, %v1108_v41 }
 0x305   :  { %1645 = vpow2.f32 %v1129_v31 }
 0x306   :  { %1647 = vpow2.f32 %v1131_v23 }
 0x307   :  { %1649 = vpow2.f32 %v1133_v21 }
 0x308   :  { %1651 = vpow2.f32 %v1135_v38 }
 0x309   :  { %1653 = vpow2.f32 %v1137_v7 }
 0x30a   :  { %1655 = vpow2.f32 %v1139_v35 }
 0x30d   :  { %v2524_v19 = vpop.eup %1641 }
 0x30e   :  { %v2526_v1 = vpop.eup %1643 }
 0x30f   :  { %v2528_v42 = vpop.eup %1645  ;;  %v1171_v37 = vrot.slane %v2526_v1, 7 }
 0x310   :  { %v2531_v61 = vpop.eup %1647  ;;  %v1173_v27 = vrot.slane %v2528_v42, 6 }
 0x311   :  { %v2534_v15 = vpop.eup %1649  ;;  %v1172_v2 = vsel %vm1032_vm2, %v1171_v37, %v2524_v19  ;;  %v1175_v57 = vrot.slane %v2531_v61, 5 }
 0x312   :  { %v2539_v11 = vpop.eup %1651  ;;  %v1174_v20 = vsel %vm1034_vm3, %v1173_v27, %v1172_v2  ;;  %v1177_v63 = vrot.slane %v2534_v15, 4 }
 0x313   :  { %v2543_v13 = vpop.eup %1653  ;;  %v1176_v9 = vsel %vm1036_vm4, %v1175_v57, %v1174_v20  ;;  %v1179_v10 = vrot.slane %v2539_v11, 3 }
 0x314   :  { %v2547_v45 = vpop.eup %1655  ;;  %v1178_v18 = vsel %vm1038_vm5, %v1177_v63, %v1176_v9  ;;  %v1181_v46 = vrot.slane %v2543_v13, 2  ;;  %v1244_v9 = vld [vmem:[#allocation2 + $0x8] sm:$0xff] }
 0x315   :  { %v1180_v48 = vsel %vm1040_vm6, %v1179_v10, %v1178_v18  ;;  %v1183_v53 = vrot.slane %v2547_v45, 1  ;;  %v1243_v10 = vld [vmem:[#allocation2] sm:$0xff]  ;;  %v1754_v18 = vmov 0.0  }
 0x316   :  { %v1182_v58 = vsel %vm1042_vm7, %v1181_v46, %v1180_v48  ;;  %1490 = vmatprep.subr.mxu1 %v1754_v18  ;;  %1492 = vmatprep.mubr.msk.f32.mxu1 %vm1755_vm9, %v1754_v18 }
 0x317   :  { %v1184_v47 = vsel %vm1044_vm8, %v1183_v53, %v1182_v58  ;;  %1491 = vmatpush3.msra.mxu1 %v1244_v9  ;;  %1485 = vmatprep.subr.mxu0 %v1754_v18 }
 0x318   :  { %v1190_v24 = vsel %vm807_vm1, %v1184_v47, 0.0  ;;  %1486 = vmatpush3.msra.mxu0 %v1243_v10  ;;  %1487 = vmatprep.mubr.msk.f32.mxu0 %vm1755_vm9, %v1754_v18 }
 0x319   :  { %1191 = vadd.xlane.f32.xlu1 %v1190_v24 }
 0x321   :  { %v1057_v54 = vpop.xlane.xlu0 %1056 }
 0x322   :  { %v1063_v60 = vrot.slane %v1057_v54, 1  ;;  %v1064_v4 = vrot.slane %v1057_v54, 2  ;;  %v1065_v8 = vrot.slane %v1057_v54, 3  ;;  %v1066_v43 = vrot.slane %v1057_v54, 4 }
 0x323   :  { %v1067_v29 = vrot.slane %v1057_v54, 5  ;;  %v1068_v26 = vrot.slane %v1057_v54, 6  ;;  %v1069_v33 = vrot.slane %v1057_v54, 7  ;;  %v1093_v55 = vsub.f32 %v2474_v28, %v1057_v54 }
 0x324   :  { %v1094_v16 = vsub.f32 %v2478_v5, %v1063_v60  ;;  %v1095_v22 = vsub.f32 %v2484_v52, %v1064_v4  ;;  %v1096_v51 = vsub.f32 %v2495_v59, %v1065_v8  ;;  %v1097_v25 = vsub.f32 %v2499_v56, %v1066_v43 }
 0x325   :  { %v1098_v44 = vsub.f32 %v2503_v39, %v1067_v29  ;;  %v1109_v36 = vmul.f32 1.442695, %v1093_v55  ;;  %v1099_v0 = vsub.f32 %v2507_v49, %v1068_v26  ;;  %v1100_v17 = vsub.f32 %v2511_v62, %v1069_v33 }
 0x326   :  { %v1111_v14 = vmul.f32 1.442695, %v1094_v16  ;;  %v1113_v30 = vmul.f32 1.442695, %v1095_v22  ;;  %v1115_v50 = vmul.f32 1.442695, %v1096_v51 }
 0x327   :  { %1657 = vpow2.f32 %v1109_v36  ;;  %v1117_v28 = vmul.f32 1.442695, %v1097_v25  ;;  %v1119_v5 = vmul.f32 1.442695, %v1098_v44  ;;  %v1121_v52 = vmul.f32 1.442695, %v1099_v0 }
 0x328   :  { %1659 = vpow2.f32 %v1111_v14  ;;  %v1123_v59 = vmul.f32 1.442695, %v1100_v17 }
 0x329   :  { %1661 = vpow2.f32 %v1113_v30 }
 0x32a   :  { %1663 = vpow2.f32 %v1115_v50 }
 0x32b   :  { %1665 = vpow2.f32 %v1117_v28 }
 0x32c   :  { %1667 = vpow2.f32 %v1119_v5 }
 0x32d   :  { %1669 = vpow2.f32 %v1121_v52 }
 0x32e   :  { %1671 = vpow2.f32 %v1123_v59 }
 0x331   :  { %v2564_v56 = vpop.eup %1657 }
 0x332   :  { %v2566_v39 = vpop.eup %1659 }
 0x333   :  { %v2568_v49 = vpop.eup %1661  ;;  %v1157_v62 = vrot.slane %v2566_v39, 7 }
 0x334   :  { %v2571_v6 = vpop.eup %1663  ;;  %v1159_v40 = vrot.slane %v2568_v49, 6 }
 0x335   :  { %v2574_v3 = vpop.eup %1665  ;;  %v1158_v34 = vsel %vm1032_vm2, %v1157_v62, %v2564_v56  ;;  %v1161_v32 = vrot.slane %v2571_v6, 5 }
 0x336   :  { %v2579_v12 = vpop.eup %1667  ;;  %v1160_v31 = vsel %vm1034_vm3, %v1159_v40, %v1158_v34  ;;  %v1163_v23 = vrot.slane %v2574_v3, 4 }
 0x337   :  { %v2583_v41 = vpop.eup %1669  ;;  %v1162_v21 = vsel %vm1036_vm4, %v1161_v32, %v1160_v31  ;;  %v1165_v38 = vrot.slane %v2579_v12, 3 }
 0x338   :  { %v2587_v7 = vpop.eup %1671  ;;  %v1164_v35 = vsel %vm1038_vm5, %v1163_v23, %v1162_v21  ;;  %v1167_v37 = vrot.slane %v2583_v41, 2 }
 0x339   :  { %v1166_v27 = vsel %vm1040_vm6, %v1165_v38, %v1164_v35  ;;  %v1169_v2 = vrot.slane %v2587_v7, 1 }
 0x33a   :  { %v1168_v57 = vsel %vm1042_vm7, %v1167_v37, %v1166_v27 }
 0x33b   :  { %v1170_v20 = vsel %vm1044_vm8, %v1169_v2, %v1168_v57 }
 0x33c   :  { %v1187_v63 = vsel %vm807_vm1, %v1170_v20, 0.0 }
 0x33d   :  { %1188 = vadd.xlane.f32.xlu0 %v1187_v63 }
 0x3a6   :  { %v1192_v46 = vpop.xlane.xlu1 %1191 }
 0x3a7   :  { %1673 = vrcp.f32 %v1192_v46 }
 0x3b1   :  { %v1674_v48 = vpop.eup %1673 }
 0x3b2   :  { %v1204_v53 = vrot.slane %v1674_v48, 1  ;;  %v1205_v58 = vrot.slane %v1674_v48, 2  ;;  %v1206_v47 = vrot.slane %v1674_v48, 3  ;;  %v1207_v24 = vrot.slane %v1674_v48, 4 }
 0x3b3   :  { %v1208_v54 = vrot.slane %v1674_v48, 5  ;;  %v1209_v60 = vrot.slane %v1674_v48, 6  ;;  %v1210_v4 = vrot.slane %v1674_v48, 7  ;;  %v1235_v33 = vmul.f32 %v1674_v48, %v2524_v19 }
 0x3b4   :  { %v1236_v8 = vmul.f32 %v2526_v1, %v1204_v53  ;;  %v1237_v43 = vmul.f32 %v2528_v42, %v1205_v58  ;;  %v1238_v29 = vmul.f32 %v2531_v61, %v1206_v47  ;;  %v1239_v26 = vmul.f32 %v2534_v15, %v1207_v24 }
 0x3b5   :  { %v1240_v55 = vmul.f32 %v2539_v11, %v1208_v54  ;;  %v1241_v51 = vmul.f32 %v2543_v13, %v1209_v60  ;;  %v1242_v25 = vmul.f32 %v2547_v45, %v1210_v4 }
 0x3b6   :  { %v1347_v16 = vrot.slane %v1236_v8, 7  ;;  %v1349_v22 = vrot.slane %v1237_v43, 6  ;;  %v1351_v36 = vrot.slane %v1238_v29, 5  ;;  %v1353_v42 = vrot.slane %v1239_v26, 4 }
 0x3b7   :  { %v1355_v0 = vrot.slane %v1240_v55, 3  ;;  %v1357_v19 = vrot.slane %v1241_v51, 2  ;;  %v1359_v14 = vrot.slane %v1242_v25, 1 }
 0x3b8   :  { %v1348_v44 = vsel %vm1032_vm2, %v1347_v16, %v1235_v33 }
 0x3b9   :  { %v1350_v1 = vsel %vm1034_vm3, %v1349_v22, %v1348_v44 }
 0x3ba   :  { %v1352_v61 = vsel %vm1036_vm4, %v1351_v36, %v1350_v1 }
 0x3bb   :  { %v1354_v15 = vsel %vm1038_vm5, %v1353_v42, %v1352_v61 }
 0x3bc   :  { %v1356_v11 = vsel %vm1040_vm6, %v1355_v0, %v1354_v15 }
 0x3bd   :  { %v1358_v30 = vsel %vm1042_vm7, %v1357_v19, %v1356_v11 }
 0x3be   :  { %v1360_v13 = vsel %vm1044_vm8, %v1359_v14, %v1358_v30 }
 0x3bf   :  { %1493 = vmatmul.mubr.msk.f32.vlgmr.msra.gmra.mrb[2].mxu1 %vm807_vm1, %v1360_v13 }
 0x3ca   :  { %v1189_v45 = vpop.xlane.xlu0 %1188 }
 0x3cb   :  { %1675 = vrcp.f32 %v1189_v45 }
 0x3d5   :  { %v1676_v50 = vpop.eup %1675 }
 0x3d6   :  { %v1197_v17 = vrot.slane %v1676_v50, 1  ;;  %v1198_v28 = vrot.slane %v1676_v50, 2  ;;  %v1199_v5 = vrot.slane %v1676_v50, 3  ;;  %v1200_v52 = vrot.slane %v1676_v50, 4 }
 0x3d7   :  { %v1201_v59 = vrot.slane %v1676_v50, 5  ;;  %v1202_v62 = vrot.slane %v1676_v50, 6  ;;  %v1203_v40 = vrot.slane %v1676_v50, 7  ;;  %v1227_v21 = vmul.f32 %v1676_v50, %v2564_v56 }
 0x3d8   :  { %v1228_v34 = vmul.f32 %v2566_v39, %v1197_v17  ;;  %v1229_v32 = vmul.f32 %v2568_v49, %v1198_v28  ;;  %v1230_v31 = vmul.f32 %v2571_v6, %v1199_v5  ;;  %v1231_v23 = vmul.f32 %v2574_v3, %v1200_v52 }
 0x3d9   :  { %v1232_v38 = vmul.f32 %v2579_v12, %v1201_v59  ;;  %v1233_v27 = vmul.f32 %v2583_v41, %v1202_v62  ;;  %v1234_v2 = vmul.f32 %v2587_v7, %v1203_v40 }
 0x3da   :  { %v1253_v35 = vrot.slane %v1228_v34, 7  ;;  %v1255_v37 = vrot.slane %v1229_v32, 6  ;;  %v1257_v20 = vrot.slane %v1230_v31, 5  ;;  %v1259_v49 = vrot.slane %v1231_v23, 4 }
 0x3db   :  { %v1261_v63 = vrot.slane %v1232_v38, 3  ;;  %v1263_v56 = vrot.slane %v1233_v27, 2  ;;  %v1265_v9 = vrot.slane %v1234_v2, 1 }
 0x3dc   :  { %v1254_v57 = vsel %vm1032_vm2, %v1253_v35, %v1227_v21 }
 0x3dd   :  { %v1256_v39 = vsel %vm1034_vm3, %v1255_v37, %v1254_v57 }
 0x3de   :  { %v1258_v6 = vsel %vm1036_vm4, %v1257_v20, %v1256_v39 }
 0x3df   :  { %v1260_v3 = vsel %vm1038_vm5, %v1259_v49, %v1258_v6 }
 0x3e0   :  { %v1262_v12 = vsel %vm1040_vm6, %v1261_v63, %v1260_v3 }
 0x3e1   :  { %v1264_v10 = vsel %vm1042_vm7, %v1263_v56, %v1262_v12 }
 0x3e2   :  { %v1266_v41 = vsel %vm1044_vm8, %v1265_v9, %v1264_v10 }
 0x3e3   :  { %1488 = vmatmul.mubr.msk.f32.vlgmr.msra.gmra.mrb[2].mxu0 %vm807_vm1, %v1266_v41 }
 0x492   :  { %v1429_v7 = vpop.f32.mrb[2].mxu1 }
 0x493   :  { %1434 = vst.msk [vmem:[#allocation7 + $0x8] sm:$0xff] %vm64_vm0, %v1429_v7  ;;  %v1494_v18 = vpop.f32.mrb[3].mxu1 }
 0x4b6   :  { %v1335_v46 = vpop.f32.mrb[2].mxu0 }
 0x4b7   :  { %1433 = vst.msk [vmem:[#allocation7] sm:$0xff] %vm64_vm0, %v1335_v46  ;;  %v1489_v48 = vpop.f32.mrb[3].mxu0 }
 0x4b8   :  { %1732 = shalt.err (!%p1729_p6)
}
 0x4b9   :  { %s1733_s20 = scalar_lea.hbm %s2651_s6, 256 }
 0x4ba   :  { %p1734_p7 = scmp.ne.s32.totalorder %s2651_s6, %s1733_s20  ;;  %p1737_p8 = scmp.lt.u32.totalorder %s1733_s20, %s2651_s6 }
 0x4bc   :  { %p1739_p9 = pnand %p1737_p8, %p1734_p7 }
 0x4be   :  { %1742 = shalt.err (!%p1739_p9)
}
 0x4bf   :  { %1446 = dma.vmem_to_hbm [thread:$0]  %s1441_s1, 256, %s2651_s6, [#allocation4], %s1750_s7, %s1750_s7, %s1751_s8  }
 0x4c0   :  { %1747 = dma.done.wait [#allocation4], 256  }
 0x4c1   :  { %1748 = vsyncadd [#allocation4], 4294967040 }
 0x4c2   :  { %1450 = vsyncpa [#allocation3], 1 }
 0x4c3   :  { %1451 = vsyncpa [#allocation6], 1 }
 0x4c4   :  { %1452 = vsyncpa [#allocation4], 1 }

</bundles_post_ra>
